<compile_context>
chip_gen: v7x
topology: tpu7x:2x2x1
jax: 0.10.0
libtpu: 0.0.40
codegen_flags: <defaults>
</compile_context>

<pallas_src>
import functools

import jax
import jax.numpy as jnp
from jax.experimental import pallas as pl
from jax.experimental.pallas import tpu as pltpu


_LANE = 128
_SUB = 8
_MAX_BLOCK_ELEMS = 1 << 20      # ~4 MiB f32 per block (double-buffered in+out
                                # stays well under a 32 MiB scoped-VMEM limit)
_FAST_PATH_MAX_ELEMS = 1 << 19  # <= 2 MiB f32 total -> fuse everything
_VMEM_LIMIT = 32 << 20          # safe on v5e (16 MiB default), v6e, v7x (64 MiB phys)


# --------------------------------------------------------------------------
# Fast path: whole tensor in one block, stats + normalize fused (1 grid step)
# --------------------------------------------------------------------------
def _bn2d_fused_kernel(x_ref, gamma_ref, beta_ref, o_ref, *, eps, inv_count):
    x = x_ref[...].astype(jnp.float32)                 # (N, C, HW)
    s = jnp.sum(x, axis=2, keepdims=True)              # (N, C, 1)  lane reduce
    sq = jnp.sum(x * x, axis=2, keepdims=True)         # (N, C, 1)
    s = jnp.sum(s, axis=0, keepdims=True)              # (1, C, 1)  batch reduce
    sq = jnp.sum(sq, axis=0, keepdims=True)            # (1, C, 1)
    mean = s * inv_count
    # Biased variance (matches PyTorch training-mode forward); f32 accumulation.
    var = sq * inv_count - mean * mean
    scale = gamma_ref[...].astype(jnp.float32) * jax.lax.rsqrt(var + eps)
    bias = beta_ref[...].astype(jnp.float32) - mean * scale
    o_ref[...] = (x * scale + bias).astype(o_ref.dtype)


def _bn2d_small(x_nchw, gamma, beta, *, eps, inv_count):
    n, c, h, w = x_nchw.shape
    hw = h * w
    x3d = x_nchw.reshape(n, c, hw)                     # free view
    g3d = gamma.reshape(1, c, 1).astype(jnp.float32)
    b3d = beta.reshape(1, c, 1).astype(jnp.float32)
    kernel = functools.partial(_bn2d_fused_kernel, eps=float(eps),
                               inv_count=float(inv_count))
    out3d = pl.pallas_call(
        kernel,
        out_shape=jax.ShapeDtypeStruct((n, c, hw), x_nchw.dtype),
        grid_spec=pltpu.PrefetchScalarGridSpec(
            num_scalar_prefetch=0,
            grid=(1,),
            in_specs=[
                pl.BlockSpec((n, c, hw), lambda i: (0, 0, 0)),
                pl.BlockSpec((1, c, 1), lambda i: (0, 0, 0)),
                pl.BlockSpec((1, c, 1), lambda i: (0, 0, 0)),
            ],
            out_specs=pl.BlockSpec((n, c, hw), lambda i: (0, 0, 0)),
        ),
        compiler_params=pltpu.CompilerParams(
            dimension_semantics=("arbitrary",),
            vmem_limit_bytes=_VMEM_LIMIT,
        ),
    )(x3d, g3d, b3d)
    return out3d.reshape(n, c, h, w)


# --------------------------------------------------------------------------
# Large path: streaming stats pass + fully-parallel normalize pass
# --------------------------------------------------------------------------
def _bn2d_stats_kernel(x_ref, sum_ref, sq_ref, acc_sum, acc_sq):
    t = pl.program_id(1)                               # reduction axis (last)

    @pl.when(t == 0)
    def _():
        acc_sum[...] = jnp.zeros_like(acc_sum)
        acc_sq[...] = jnp.zeros_like(acc_sq)

    x = x_ref[...].astype(jnp.float32)                 # (rb, ht)
    acc_sum[...] += jnp.sum(x, axis=-1, keepdims=True)
    acc_sq[...] += jnp.sum(x * x, axis=-1, keepdims=True)

    @pl.when(t == pl.num_programs(1) - 1)
    def _():
        sum_ref[...] = acc_sum[...]
        sq_ref[...] = acc_sq[...]


def _bn2d_norm_kernel(x_ref, scale_ref, bias_ref, o_ref):
    x = x_ref[...].astype(jnp.float32)                 # (rb, ht)
    o_ref[...] = (x * scale_ref[...] + bias_ref[...]).astype(o_ref.dtype)


def _pick_tiles(nc, hw):
    """Pick (row_block, hw_tile) from a VMEM budget.

    Last two block dims must be multiples of (8, 128) or equal the full
    array dims; lane-dense (wide last dim) is prioritized.
    """
    # Spatial (lane) tile first.
    if hw % _LANE != 0:
        # TODO(synk): masked-tail tiling for H*W not a multiple of 128; fall
        # back to the full extent (always legal, may be large for huge H*W).
        ht = hw
    else:
        budget_ht = max(_LANE, min(hw, (_MAX_BLOCK_ELEMS // _SUB) // _LANE * _LANE))
        ht = _LANE
        d = _LANE
        while d <= budget_ht:
            if hw % d == 0:
                ht = d
            d += _LANE
    # Row (sublane) tile from the remaining budget.
    if nc % _SUB != 0:
        rb = nc
    else:
        budget_rb = max(_SUB, (_MAX_BLOCK_ELEMS // ht) // _SUB * _SUB)
        rb = _SUB
        d = _SUB
        while d <= min(nc, budget_rb):
            if nc % d == 0:
                rb = d
            d += _SUB
    return rb, ht


def _bn2d_large(x_nchw, gamma, beta, *, eps, inv_count):
    n, c, h, w = x_nchw.shape
    hw = h * w
    nc = n * c
    x2d = x_nchw.reshape(nc, hw)                       # free view of NCHW
    rb, ht = _pick_tiles(nc, hw)
    nrb = nc // rb
    nht = hw // ht

    # ---- Pass 1: per-row (n, c) sums / sums of squares --------------------
    row_sum, row_sq = pl.pallas_call(
        _bn2d_stats_kernel,
        out_shape=(jax.ShapeDtypeStruct((nc, 1), jnp.float32),
                   jax.ShapeDtypeStruct((nc, 1), jnp.float32)),
        grid_spec=pltpu.PrefetchScalarGridSpec(
            num_scalar_prefetch=0,
            grid=(nrb, nht),
            in_specs=[pl.BlockSpec((rb, ht), lambda r, t: (r, t))],
            out_specs=[pl.BlockSpec((rb, 1), lambda r, t: (r, 0)),
                       pl.BlockSpec((rb, 1), lambda r, t: (r, 0))],
            scratch_shapes=[pltpu.VMEM((rb, 1), jnp.float32),
                            pltpu.VMEM((rb, 1), jnp.float32)],
        ),
        compiler_params=pltpu.CompilerParams(
            dimension_semantics=("parallel", "arbitrary"),
            vmem_limit_bytes=_VMEM_LIMIT,
        ),
    )(x2d)

    # ---- Tiny O(C) finalize between the two calls (plain JAX) -------------
    ch_sum = jnp.sum(row_sum.reshape(n, c), axis=0)
    ch_sq = jnp.sum(row_sq.reshape(n, c), axis=0)
    mean = ch_sum * inv_count
    var = ch_sq * inv_count - mean * mean              # biased variance
    scale_c = gamma.astype(jnp.float32) * jax.lax.rsqrt(var + eps)
    bias_c = beta.astype(jnp.float32) - mean * scale_c
    scale_rows = jnp.broadcast_to(scale_c[None, :], (n, c)).reshape(nc, 1)
    bias_rows = jnp.broadcast_to(bias_c[None, :], (n, c)).reshape(nc, 1)

    # ---- Pass 2: normalize (embarrassingly parallel) -----------------------
    out2d = pl.pallas_call(
        _bn2d_norm_kernel,
        out_shape=jax.ShapeDtypeStruct((nc, hw), x_nchw.dtype),
        grid_spec=pltpu.PrefetchScalarGridSpec(
            num_scalar_prefetch=0,
            grid=(nrb, nht),
            in_specs=[pl.BlockSpec((rb, ht), lambda r, t: (r, t)),
                      pl.BlockSpec((rb, 1), lambda r, t: (r, 0)),
                      pl.BlockSpec((rb, 1), lambda r, t: (r, 0))],
            out_specs=pl.BlockSpec((rb, ht), lambda r, t: (r, t)),
        ),
        compiler_params=pltpu.CompilerParams(
            dimension_semantics=("parallel", "parallel"),
            vmem_limit_bytes=_VMEM_LIMIT,
        ),
    )(x2d, scale_rows, bias_rows)

    return out2d.reshape(n, c, h, w)


# --------------------------------------------------------------------------
# Public entry point
# --------------------------------------------------------------------------
def batchnorm2d(x_nchw, gamma, beta, *, eps):
    """x_nchw: (N, C, H, W). gamma, beta: (C,). Returns (N, C, H, W)."""
    n, c, h, w = x_nchw.shape
    hw = h * w
    inv_count = 1.0 / float(n * hw)
    if n * c * hw <= _FAST_PATH_MAX_ELEMS:
        return _bn2d_small(x_nchw, gamma, beta, eps=eps, inv_count=inv_count)
    return _bn2d_large(x_nchw, gamma, beta, eps=eps, inv_count=inv_count)


def _reference(x, gamma, beta, eps):
    c = x.shape[1]
    mean = jnp.mean(x, axis=(0, 2, 3), keepdims=True)
    var = jnp.mean((x - mean) ** 2, axis=(0, 2, 3), keepdims=True)
    return (x - mean) / jnp.sqrt(var + eps) * gamma.reshape(1, c, 1, 1) \
        + beta.reshape(1, c, 1, 1)


if __name__ == "__main__":
    # Module config: LayerTest(out=4, eps=1e-5, momentum=0.1)
    # TODO(synk): running_mean/running_var tracking (momentum) not reproduced;
    # the training-mode forward output does not depend on it.
    eps = 1e-5
    key = jax.random.PRNGKey(0)

    # --- Benchmark shape (fast fused path) ---------------------------------
    N, C, H, W = 2, 4, 16, 16
    x = jax.random.normal(key, (N, C, H, W), dtype=jnp.float32)
    gamma = jnp.ones((C,), dtype=jnp.float32)
    beta = jnp.zeros((C,), dtype=jnp.float32)
    y = batchnorm2d(x, gamma, beta, eps=eps)
    jax.block_until_ready(y)
    assert jnp.allclose(y, _reference(x, gamma, beta, eps), atol=1e-4, rtol=1e-5)

    # --- Larger shape exercising the two-pass tiled path --------------------
    N2, C2, H2, W2 = 2, 8, 512, 512
    x2 = jax.random.normal(jax.random.PRNGKey(1), (N2, C2, H2, W2),
                           dtype=jnp.float32)
    gamma2 = jnp.ones((C2,), dtype=jnp.float32)
    beta2 = jnp.zeros((C2,), dtype=jnp.float32)
    y2 = batchnorm2d(x2, gamma2, beta2, eps=eps)
    jax.block_until_ready(y2)
    assert jnp.allclose(y2, _reference(x2, gamma2, beta2, eps),
                        atol=1e-3, rtol=1e-4)

    print("KERNEL_OK")
</pallas_src>

<mosaic_0001>
module attributes {stable_mosaic.version = 11 : i64} {
  func.func @_bn2d_fused_kernel(%arg0: i32, %arg1: memref<2x4x256xf32, #tpu.memory_space<vmem>>, %arg2: memref<1x4x1xf32, #tpu.memory_space<vmem>>, %arg3: memref<1x4x1xf32, #tpu.memory_space<vmem>>, %arg4: memref<2x4x256xf32, #tpu.memory_space<vmem>>) attributes {dimension_semantics = [#tpu.dimension_semantics<arbitrary>], iteration_bounds = array<i64: 1>, scalar_prefetch = 0 : i64, scratch_operands = 0 : i64, tpu.core_type = #tpu.core_type<tc>, window_params = [{pipeline_mode = #tpu.pipeline_mode<synchronous>, transform_indices = @transform_0, window_bounds = array<i64: 2, 4, 256>}, {pipeline_mode = #tpu.pipeline_mode<synchronous>, transform_indices = @transform_1, window_bounds = array<i64: 1, 4, 1>}, {pipeline_mode = #tpu.pipeline_mode<synchronous>, transform_indices = @transform_2, window_bounds = array<i64: 1, 4, 1>}, {pipeline_mode = #tpu.pipeline_mode<synchronous>, transform_indices = @transform_3, window_bounds = array<i64: 2, 4, 256>}]} {
    %c0 = arith.constant 0 : index
    %c0_0 = arith.constant 0 : index
    %c0_1 = arith.constant 0 : index
    %0 = vector.load %arg1[%c0, %c0_0, %c0_1] : memref<2x4x256xf32, #tpu.memory_space<vmem>>, vector<2x4x256xf32>
    %cst = arith.constant dense<0.000000e+00> : vector<2x4xf32>
    %1 = vector.multi_reduction <add>, %0, %cst [2] : vector<2x4x256xf32> to vector<2x4xf32>
    %2 = vector.shape_cast %1 : vector<2x4xf32> to vector<2x4x1xf32>
    %3 = arith.mulf %0, %0 : vector<2x4x256xf32>
    %cst_2 = arith.constant dense<0.000000e+00> : vector<2x4xf32>
    %4 = vector.multi_reduction <add>, %3, %cst_2 [2] : vector<2x4x256xf32> to vector<2x4xf32>
    %5 = vector.shape_cast %4 : vector<2x4xf32> to vector<2x4x1xf32>
    %cst_3 = arith.constant dense<0.000000e+00> : vector<4x1xf32>
    %6 = vector.multi_reduction <add>, %2, %cst_3 [0] : vector<2x4x1xf32> to vector<4x1xf32>
    %7 = vector.shape_cast %6 : vector<4x1xf32> to vector<1x4x1xf32>
    %cst_4 = arith.constant dense<0.000000e+00> : vector<4x1xf32>
    %8 = vector.multi_reduction <add>, %5, %cst_4 [0] : vector<2x4x1xf32> to vector<4x1xf32>
    %9 = vector.shape_cast %8 : vector<4x1xf32> to vector<1x4x1xf32>
    %cst_5 = arith.constant 0.001953125 : f32
    %10 = vector.broadcast %cst_5 : f32 to vector<1x4x1xf32>
    %11 = arith.mulf %7, %10 : vector<1x4x1xf32>
    %cst_6 = arith.constant 0.001953125 : f32
    %12 = vector.broadcast %cst_6 : f32 to vector<1x4x1xf32>
    %13 = arith.mulf %9, %12 : vector<1x4x1xf32>
    %14 = arith.mulf %11, %11 : vector<1x4x1xf32>
    %15 = arith.subf %13, %14 : vector<1x4x1xf32>
    %c0_7 = arith.constant 0 : index
    %c0_8 = arith.constant 0 : index
    %c0_9 = arith.constant 0 : index
    %16 = vector.load %arg2[%c0_7, %c0_8, %c0_9] : memref<1x4x1xf32, #tpu.memory_space<vmem>>, vector<1x4x1xf32>
    %cst_10 = arith.constant 9.99999974E-6 : f32
    %17 = vector.broadcast %cst_10 : f32 to vector<1x4x1xf32>
    %18 = arith.addf %15, %17 : vector<1x4x1xf32>
    %19 = math.rsqrt %18 : vector<1x4x1xf32>
    %20 = arith.mulf %16, %19 : vector<1x4x1xf32>
    %c0_11 = arith.constant 0 : index
    %c0_12 = arith.constant 0 : index
    %c0_13 = arith.constant 0 : index
    %21 = vector.load %arg3[%c0_11, %c0_12, %c0_13] : memref<1x4x1xf32, #tpu.memory_space<vmem>>, vector<1x4x1xf32>
    %22 = arith.mulf %11, %20 : vector<1x4x1xf32>
    %23 = arith.subf %21, %22 : vector<1x4x1xf32>
    %24 = vector.broadcast %20 : vector<1x4x1xf32> to vector<2x4x256xf32>
    %25 = arith.mulf %0, %24 : vector<2x4x256xf32>
    %26 = vector.broadcast %23 : vector<1x4x1xf32> to vector<2x4x256xf32>
    %27 = arith.addf %25, %26 : vector<2x4x256xf32>
    %c0_14 = arith.constant 0 : index
    %c0_15 = arith.constant 0 : index
    %c0_16 = arith.constant 0 : index
    %28 = vector.load %arg4[%c0_14, %c0_15, %c0_16] : memref<2x4x256xf32, #tpu.memory_space<vmem>>, vector<2x4x256xf32>
    tpu.vector_store %arg4[%c0_14, %c0_15, %c0_16], %27 {strides = array<i32>} : memref<2x4x256xf32, #tpu.memory_space<vmem>>, vector<2x4x256xf32>,
    return
  }
  func.func @transform_0(%arg0: i32) -> (i32, i32, i32) {
    %c0_i32 = arith.constant 0 : i32
    %c0_i32_0 = arith.constant 0 : i32
    %c0_i32_1 = arith.constant 0 : i32
    %c0_i32_2 = arith.constant 0 : i32
    return %c0_i32, %c0_i32_0, %c0_i32_1 : i32, i32, i32
  }
  func.func @transform_1(%arg0: i32) -> (i32, i32, i32) {
    %c0_i32 = arith.constant 0 : i32
    %c0_i32_0 = arith.constant 0 : i32
    %c0_i32_1 = arith.constant 0 : i32
    %c0_i32_2 = arith.constant 0 : i32
    return %c0_i32, %c0_i32_0, %c0_i32_1 : i32, i32, i32
  }
  func.func @transform_2(%arg0: i32) -> (i32, i32, i32) {
    %c0_i32 = arith.constant 0 : i32
    %c0_i32_0 = arith.constant 0 : i32
    %c0_i32_1 = arith.constant 0 : i32
    %c0_i32_2 = arith.constant 0 : i32
    return %c0_i32, %c0_i32_0, %c0_i32_1 : i32, i32, i32
  }
  func.func @transform_3(%arg0: i32) -> (i32, i32, i32) {
    %c0_i32 = arith.constant 0 : i32
    %c0_i32_0 = arith.constant 0 : i32
    %c0_i32_1 = arith.constant 0 : i32
    %c0_i32_2 = arith.constant 0 : i32
    return %c0_i32, %c0_i32_0, %c0_i32_1 : i32, i32, i32
  }
}

</mosaic_0001>

<bundles_post_ra>
// kernel: tpu_custom_call.1
= control target key start
LH: loop header
LB: loop body
LE: loop exit
PB: predicated region body
PF: predicated region fallthrough
CT: control target
= control target key end

     0   :  { %8 = vsyncpa [#allocation3], 0  ;;  %s264_s0 = inlined_call_operand.hbm [shape: f32[2,4,256], index: 0, kind: input, shape index: {}]   ;;  %s265_s1 = inlined_call_operand.vmem [shape: f32[1,4,1], index: 1, kind: input, shape index: {}]   ;;  %s266_s2 = inlined_call_operand.vmem [shape: f32[1,4,1], index: 2, kind: input, shape index: {}]   ;;  %s267_s3 = inlined_call_operand.hbm [shape: f32[2,4,256], index: 3, kind: output, shape index: {}]  }
   0x1   :  { %9 = vsyncpa [#allocation4], 0  ;;  %s190_s12 = smov [#allocation2]   ;;  %s142_s16 = scalar_lea.hbm %s264_s0, 256 }
   0x2   :  { %s15_s13 = sshll.u32 %s190_s12, 4  ;;  %p143_p0 = scmp.ne.s32.totalorder %s264_s0, %s142_s16  ;;  %s16_s13 = int_to_ptr.vmem [resolvable:$true] %s15_s13 }
   0x3   :  { %p146_p1 = scmp.lt.u32.totalorder %s142_s16, %s264_s0 }
   0x5   :  { %p148_p2 = pnand %p146_p1, %p143_p0 }
   0x7   :  { %151 = shalt.err (!%p148_p2)
}
   0x8   :  { %s152_s21 = scalar_lea.vmem %s16_s13, 256  ;;  %p157_p4 = scmp.lt.s32.totalorder %s16_s13, %s16_s13 }
   0x9   :  { %p153_p3 = scmp.ne.s32.totalorder %s16_s13, %s152_s21  ;;  %p158_p5 = scmp.lt.s32.totalorder %s152_s21, %s152_s21 }
   0xb   :  { %p159_p6 = por %p158_p5, %p157_p4 }
   0xd   :  { %p160_p7 = pnand %p159_p6, %p153_p3 }
   0xf   :  { %163 = shalt.err (!%p160_p7)
}
  0x10   :  { %s191_s22 = smov 128   ;;  %s192_s23 = smov 8  }
  0x11   :  { %21 = dma.hbm_to_vmem [thread:$0]  %s264_s0, 256, %s16_s13, [#allocation3], %s191_s22, %s191_s22, %s192_s23  }
  0x12   :  { %186 = dma.done.wait [#allocation3], 256  }
  0x13   :  { %187 = vsyncadd [#allocation3], 4294967040  ;;  %vm37_vm0 = vcmask 1043456   ;;  %v29_v0 = vld [vmem:[#allocation2] sm:$0xff]  ;;  %v30_v1 = vld [vmem:[#allocation2 + $0x8] sm:$0xff]  ;;  %v193_v20 = vmov 0   ;;  %v90_v44 = vlaneseq }
  0x14   :  { %v33_v2 = vcombine.high %v29_v0, %v29_v0  ;;  %v38_v3 = vsel %vm37_vm0, %v29_v0, 0.0  ;;  %v48_v4 = vmul.f32 %v29_v0, %v29_v0  ;;  %v34_v5 = vcombine.high %v30_v1, %v30_v1  ;;  %136 = vset.pattern.permute.xlu0 %v193_v20  ;;  %137 = vset.pattern.permute.xlu1 %v193_v20  ;;  %v76_v36 = vld [vmem:[%s265_s1] sm:$0xf]  ;;  %s195_s1 = smov [#allocation5]  }
  0x15   :  { %v43_v6 = vsel %vm37_vm0, %v30_v1, 0.0  ;;  %v49_v7 = vmul.f32 %v30_v1, %v30_v1  ;;  %v80_v39 = vld [vmem:[%s266_s2] sm:$0xf]  ;;  %v194_v42 = vmov 839922192   ;;  %v91_v46 = vshrl.u32 %v90_v44, 7 }
  0x16   :  { %v39_v8 = vsel %vm37_vm0, %v33_v2, 0.0  ;;  %v52_v9 = vcombine.high %v48_v4, %v48_v4  ;;  %v56_v10 = vsel %vm37_vm0, %v48_v4, 0.0  ;;  %v44_v11 = vsel %vm37_vm0, %v34_v5, 0.0  ;;  %s118_s29 = sshll.u32 %s195_s1, 4  ;;  %s119_s29 = int_to_ptr.vmem [resolvable:$true] %s118_s29 }
  0x17   :  { %v40_v12 = vadd.f32 %v39_v8, %v38_v3  ;;  %v53_v13 = vcombine.high %v49_v7, %v49_v7  ;;  %v61_v15 = vsel %vm37_vm0, %v49_v7, 0.0  ;;  %v45_v17 = vadd.f32 %v44_v11, %v43_v6  ;;  %s164_s2 = scalar_lea.vmem %s119_s29, 256  ;;  %p169_p9 = scmp.lt.s32.totalorder %s119_s29, %s119_s29 }
  0x18   :  { %v57_v14 = vsel %vm37_vm0, %v52_v9, 0.0  ;;  %v88_v43 = vunpack.c.l.s4 %v194_v42  ;;  %p165_p8 = scmp.ne.s32.totalorder %s119_s29, %s164_s2  ;;  %p170_p10 = scmp.lt.s32.totalorder %s164_s2, %s164_s2 }
  0x19   :  { %41 = vadd.xlane.f32.xlu0 %v40_v12  ;;  %v58_v16 = vadd.f32 %v57_v14, %v56_v10  ;;  %v62_v18 = vsel %vm37_vm0, %v53_v13, 0.0 }
  0x1a   :  { %v63_v19 = vadd.f32 %v62_v18, %v61_v15  ;;  %v89_v45 = vunpack.c.0.s8 %v88_v43  ;;  %p171_p11 = por %p170_p10, %p169_p9 }
  0x1b   :  { %59 = vadd.xlane.f32.xlu1 %v58_v16 }
  0x1c   :  { %v92_v47 = vsub.s32 %v89_v45, %v91_v46  ;;  %p172_p12 = pnand %p171_p11, %p165_p8 }
  0x1d   :  { %46 = vadd.xlane.f32.xlu0 %v45_v17 }
  0x1f   :  { %64 = vadd.xlane.f32.xlu1 %v63_v19 }
  0xa6   :  { %v42_v21 = vpop.xlane.xlu0 %41 }
  0xa7   :  { %v66_v24 = vsel %vm37_vm0, %v42_v21, 0.0 }
  0xa8   :  { %v60_v22 = vpop.xlane.xlu1 %59 }
  0xa9   :  { %v69_v28 = vsel %vm37_vm0, %v60_v22, 0.0 }
  0xaa   :  { %v47_v23 = vpop.xlane.xlu0 %46 }
  0xab   :  { %v67_v25 = vsel %vm37_vm0, %v47_v23, 0.0 }
  0xac   :  { %v68_v26 = vadd.f32 %v67_v25, %v66_v24  ;;  %v65_v27 = vpop.xlane.xlu1 %64 }
  0xad   :  { %v70_v29 = vsel %vm37_vm0, %v65_v27, 0.0 }
  0xae   :  { %v72_v30 = vmul.f32 0.001953125, %v68_v26  ;;  %v71_v31 = vadd.f32 %v70_v29, %v69_v28 }
  0xb0   :  { %v74_v32 = vmul.f32 %v72_v30, %v72_v30  ;;  %v73_v33 = vmul.f32 0.001953125, %v71_v31 }
  0xb2   :  { %v75_v34 = vsub.f32 %v73_v33, %v74_v32 }
  0xb4   :  { %v77_v35 = vadd.f32 1e-05, %v75_v34 }
  0xb6   :  { %140 = vrsqrt.f32 %v77_v35 }
  0xc0   :  { %v141_v37 = vpop.eup %140 }
  0xc1   :  { %v79_v38 = vmul.f32 %v141_v37, %v76_v36 }
  0xc3   :  { %85 = vperm.xlu0 %136, %v79_v38   ;;  %v81_v40 = vmul.f32 %v79_v38, %v72_v30 }
  0xc5   :  { %v82_v41 = vsub.f32 %v80_v39, %v81_v40 }
  0xc7   :  { %99 = vperm.xlu1 %137, %v82_v41  }
 0x142   :  { %v86_v48 = vpop.permute.xlu0 %85 }
 0x143   :  { %v93_v49 = vrot.slane %v86_v48, %v92_v47 }
 0x145   :  { %v95_v51 = vmul.f32 %v93_v49, %v29_v0  ;;  %v96_v52 = vmul.f32 %v93_v49, %v30_v1 }
 0x146   :  { %v100_v50 = vpop.permute.xlu1 %99 }
 0x147   :  { %v107_v53 = vrot.slane %v100_v50, %v92_v47 }
 0x149   :  { %v109_v54 = vadd.f32 %v107_v53, %v95_v51  ;;  %v110_v55 = vadd.f32 %v107_v53, %v96_v52 }
 0x14b   :  { %111 = vst [vmem:[#allocation5] sm:$0xff] %v109_v54  ;;  %112 = vst [vmem:[#allocation5 + $0x8] sm:$0xff] %v110_v55 }
 0x14c   :  { %175 = shalt.err (!%p172_p12)
}
 0x14d   :  { %s176_s5 = scalar_lea.hbm %s267_s3, 256 }
 0x14e   :  { %p177_p13 = scmp.ne.s32.totalorder %s267_s3, %s176_s5  ;;  %p180_p0 = scmp.lt.u32.totalorder %s176_s5, %s267_s3 }
 0x150   :  { %p182_p1 = pnand %p180_p0, %p177_p13 }
 0x152   :  { %185 = shalt.err (!%p182_p1)
}
 0x153   :  { %124 = dma.vmem_to_hbm [thread:$0]  %s119_s29, 256, %s267_s3, [#allocation4], %s191_s22, %s191_s22, %s192_s23  }
 0x154   :  { %188 = dma.done.wait [#allocation4], 256  }
 0x155   :  { %189 = vsyncadd [#allocation4], 4294967040 }
 0x156   :  { %128 = vsyncpa [#allocation3], 1 }
 0x157   :  { %129 = vsyncpa [#allocation4], 1 }

</bundles_post_ra>
